<compile_context>
chip_gen: v5e
topology: v5e:2x2
jax: 0.10.0
libtpu: 0.0.40
codegen_flags: <defaults>
</compile_context>

<pallas_src>
import math
import functools

import jax
import jax.numpy as jnp
from jax.experimental import pallas as pl
from jax.experimental.pallas import tpu as pltpu


# Safe scoped-VMEM ceiling on v5e/v6e (128 MiB physical) and v7x (64 MiB).
_VMEM_LIMIT = 48 * 1024 * 1024


def _pick_tile(n, candidates=(512, 256, 128)):
    """Largest candidate tile that divides n; else the full (small) extent."""
    for t in candidates:
        if n % t == 0:
            return t
    return n


# ----------------------------------------------------------------------------
# Kernels
# ----------------------------------------------------------------------------
def _qkv_proj_kernel(q_ref, k_ref, v_ref,
                     wq_ref, bq_ref, wk_ref, bk_ref, wv_ref, bv_ref,
                     qp_ref, kp_ref, vp_ref):
    # Row tile (tm, H) of Q/K/V; weights are (H, H) bf16, biases (1, H) f32.
    q = q_ref[...].astype(jnp.bfloat16)
    k = k_ref[...].astype(jnp.bfloat16)
    v = v_ref[...].astype(jnp.bfloat16)
    qp_ref[...] = (jnp.dot(q, wq_ref[...], preferred_element_type=jnp.float32)
                   + bq_ref[...]).astype(qp_ref.dtype)
    kp_ref[...] = (jnp.dot(k, wk_ref[...], preferred_element_type=jnp.float32)
                   + bk_ref[...]).astype(kp_ref.dtype)
    vp_ref[...] = (jnp.dot(v, wv_ref[...], preferred_element_type=jnp.float32)
                   + bv_ref[...]).astype(vp_ref.dtype)


def _attn_kernel(q_ref, k_ref, v_ref, mask_ref, o_ref, *, scale):
    # q: (n_heads, tq, d_k) bf16, k/v: (n_heads, S, d_k) bf16, mask: (tq, S) i8.
    q = q_ref[0]
    k = k_ref[0]
    v = v_ref[0]
    mask = mask_ref[0].astype(jnp.float32)          # 0.0 / 1.0, nonzero = masked

    # Batched over heads on the MXU, f32 accumulation.
    scores = jnp.einsum("hqd,hkd->hqk", q, k,
                        preferred_element_type=jnp.float32) * scale
    scores = jnp.where(mask[None, :, :] != 0.0, jnp.float32(-1e9), scores)

    # Softmax over keys in f32 (matches nn.Softmax(dim=-1)).
    scores = scores - jnp.max(scores, axis=-1, keepdims=True)
    e = jnp.exp(scores)
    attn = e * pl.reciprocal(jnp.sum(e, axis=-1, keepdims=True), approx=True)
    # TODO(synk): attention dropout skipped (eval-mode identity).

    ctx = jnp.einsum("hqk,hkd->hqd", attn.astype(v.dtype), v,
                     preferred_element_type=jnp.float32)
    o_ref[0] = ctx.astype(o_ref.dtype)


def _linear_kernel(x_ref, w_ref, b_ref, o_ref):
    x = x_ref[...].astype(jnp.bfloat16)
    y = jnp.dot(x, w_ref[...], preferred_element_type=jnp.float32) + b_ref[...]
    o_ref[...] = y.astype(o_ref.dtype)


# ----------------------------------------------------------------------------
# pallas_call wrappers
# ----------------------------------------------------------------------------
def _qkv_projection(q2, k2, v2, wq_t, bq, wk_t, bk, wv_t, bv, *, tm):
    rows, H = q2.shape
    row_spec = pl.BlockSpec((tm, H), lambda r: (r, 0))
    w_spec = pl.BlockSpec((H, H), lambda r: (0, 0))
    b_spec = pl.BlockSpec((1, H), lambda r: (0, 0))
    out = jax.ShapeDtypeStruct((rows, H), jnp.bfloat16)
    return pl.pallas_call(
        _qkv_proj_kernel,
        out_shape=(out, out, out),
        grid_spec=pltpu.PrefetchScalarGridSpec(
            num_scalar_prefetch=0,
            grid=(rows // tm,),
            in_specs=[row_spec, row_spec, row_spec,
                      w_spec, b_spec, w_spec, b_spec, w_spec, b_spec],
            out_specs=(row_spec, row_spec, row_spec),
        ),
        compiler_params=pltpu.CompilerParams(
            dimension_semantics=("parallel",),
            vmem_limit_bytes=_VMEM_LIMIT),
    )(q2, k2, v2, wq_t, bq, wk_t, bk, wv_t, bv)


def _attention(qh, kh, vh, mask_i8, *, scale, tq):
    B, n_heads, S, d_k = qh.shape
    kernel = functools.partial(_attn_kernel, scale=scale)
    return pl.pallas_call(
        kernel,
        out_shape=jax.ShapeDtypeStruct((B, n_heads, S, d_k), jnp.bfloat16),
        grid_spec=pltpu.PrefetchScalarGridSpec(
            num_scalar_prefetch=0,
            grid=(B, S // tq),
            in_specs=[
                pl.BlockSpec((1, n_heads, tq, d_k), lambda b, qi: (b, 0, qi, 0)),
                pl.BlockSpec((1, n_heads, S, d_k), lambda b, qi: (b, 0, 0, 0)),
                pl.BlockSpec((1, n_heads, S, d_k), lambda b, qi: (b, 0, 0, 0)),
                pl.BlockSpec((1, tq, S), lambda b, qi: (b, qi, 0)),
            ],
            out_specs=pl.BlockSpec((1, n_heads, tq, d_k),
                                   lambda b, qi: (b, 0, qi, 0)),
        ),
        compiler_params=pltpu.CompilerParams(
            dimension_semantics=("parallel", "parallel"),
            vmem_limit_bytes=_VMEM_LIMIT),
    )(qh, kh, vh, mask_i8)


def _linear(x2, w_t, b, *, tm, out_dtype):
    rows, H = x2.shape
    return pl.pallas_call(
        _linear_kernel,
        out_shape=jax.ShapeDtypeStruct((rows, H), out_dtype),
        grid_spec=pltpu.PrefetchScalarGridSpec(
            num_scalar_prefetch=0,
            grid=(rows // tm,),
            in_specs=[pl.BlockSpec((tm, H), lambda r: (r, 0)),
                      pl.BlockSpec((H, H), lambda r: (0, 0)),
                      pl.BlockSpec((1, H), lambda r: (0, 0))],
            out_specs=pl.BlockSpec((tm, H), lambda r: (r, 0)),
        ),
        compiler_params=pltpu.CompilerParams(
            dimension_semantics=("parallel",),
            vmem_limit_bytes=_VMEM_LIMIT),
    )(x2, w_t, b)


def multi_head_attention(Q, K, V, attn_mask, params, *, n_heads):
    """Q, K, V: [B, S, H] f32; attn_mask: [B, S, S] (nonzero = masked)."""
    B, S, H = Q.shape
    d_k = H // n_heads
    rows = B * S

    # PyTorch Linear computes x @ W^T + b: pre-transpose once, weights in bf16
    # (MXU rhs), biases stay f32.
    wq_t = params["wq"].T.astype(jnp.bfloat16)
    wk_t = params["wk"].T.astype(jnp.bfloat16)
    wv_t = params["wv"].T.astype(jnp.bfloat16)
    wo_t = params["wo"].T.astype(jnp.bfloat16)
    bq = params["bq"].reshape(1, H).astype(jnp.float32)
    bk = params["bk"].reshape(1, H).astype(jnp.float32)
    bv = params["bv"].reshape(1, H).astype(jnp.float32)
    bo = params["bo"].reshape(1, H).astype(jnp.float32)

    tm = _pick_tile(rows)          # row tile for the projection GEMMs
    tq = _pick_tile(S, (256, 128))  # query tile for the attention grid

    # ---- Q/K/V projections as one large-M GEMM kernel over (B*S, H) rows ----
    q2 = Q.reshape(rows, H)
    k2 = K.reshape(rows, H)
    v2 = V.reshape(rows, H)
    qp, kp, vp = _qkv_projection(q2, k2, v2, wq_t, bq, wk_t, bk, wv_t, bv, tm=tm)

    # ---- head split: layout plumbing in XLA, outside the kernels ----
    def split_heads(x):
        return x.reshape(B, S, n_heads, d_k).transpose(0, 2, 1, 3)

    qh, kh, vh = split_heads(qp), split_heads(kp), split_heads(vp)
    mask_i8 = (attn_mask != 0).astype(jnp.int8)      # shrink mask DMA 4x

    # ---- batched-head attention, grid = (batch, query tiles) ----
    ctx = _attention(qh, kh, vh, mask_i8, scale=1.0 / math.sqrt(d_k), tq=tq)

    # ---- head merge (XLA) + output projection as a large-M GEMM ----
    ctx2 = ctx.transpose(0, 2, 1, 3).reshape(rows, H)
    out2 = _linear(ctx2, wo_t, bo, tm=tm, out_dtype=Q.dtype)
    return out2.reshape(B, S, H)


def _reference(Q, K, V, attn_mask, params, *, n_heads):
    """Pure-JAX f32 reference mirroring the PyTorch forward (eval mode)."""
    B, S, H = Q.shape
    d_k = H // n_heads

    def lin(x, w, b):
        return x @ w.T + b

    q_s = lin(Q, params["wq"], params["bq"]).reshape(B, S, n_heads, d_k).transpose(0, 2, 1, 3)
    k_s = lin(K, params["wk"], params["bk"]).reshape(B, S, n_heads, d_k).transpose(0, 2, 1, 3)
    v_s = lin(V, params["wv"], params["bv"]).reshape(B, S, n_heads, d_k).transpose(0, 2, 1, 3)

    mask = (attn_mask != 0)[:, None, :, :]
    scores = jnp.einsum("bhqd,bhkd->bhqk", q_s, k_s) / math.sqrt(d_k)
    scores = jnp.where(mask, -1e9, scores)
    attn = jax.nn.softmax(scores, axis=-1)
    context = jnp.einsum("bhqk,bhkd->bhqd", attn, v_s)
    context = context.transpose(0, 2, 1, 3).reshape(B, S, H)
    return lin(context, params["wo"], params["bo"])


if __name__ == "__main__":
    B, S, H, n_heads = 2, 8, 32, 4

    key = jax.random.PRNGKey(0)
    keys = jax.random.split(key, 12)

    bound = 1.0 / math.sqrt(H)   # PyTorch nn.Linear default init range
    params = {
        "wq": jax.random.uniform(keys[0], (H, H), jnp.float32, -bound, bound),
        "bq": jax.random.uniform(keys[1], (H,), jnp.float32, -bound, bound),
        "wk": jax.random.uniform(keys[2], (H, H), jnp.float32, -bound, bound),
        "bk": jax.random.uniform(keys[3], (H,), jnp.float32, -bound, bound),
        "wv": jax.random.uniform(keys[4], (H, H), jnp.float32, -bound, bound),
        "bv": jax.random.uniform(keys[5], (H,), jnp.float32, -bound, bound),
        "wo": jax.random.uniform(keys[6], (H, H), jnp.float32, -bound, bound),
        "bo": jax.random.uniform(keys[7], (H,), jnp.float32, -bound, bound),
    }

    Q = jax.random.normal(keys[8], (B, S, H), jnp.float32)
    K = jax.random.normal(keys[9], (B, S, H), jnp.float32)
    V = jax.random.normal(keys[10], (B, S, H), jnp.float32)
    # Boolean attention mask: mask out a few random positions (True = masked).
    attn_mask = (jax.random.uniform(keys[11], (B, S, S)) < 0.2).astype(jnp.int32)

    mha = jax.jit(functools.partial(multi_head_attention, n_heads=n_heads))
    out = mha(Q, K, V, attn_mask, params)
    out = jax.block_until_ready(out)

    ref = _reference(Q, K, V, attn_mask, params, n_heads=n_heads)
    assert out.shape == (B, S, H)
    # bf16 MXU operands + approx reciprocal => compare at bf16-level tolerance.
    assert jnp.allclose(out, ref, atol=5e-2, rtol=5e-2), \
        f"max abs err = {jnp.max(jnp.abs(out - ref))}"

    print("KERNEL_OK")
</pallas_src>

<mosaic_0001>
module attributes {stable_mosaic.version = 11 : i64} {
  func.func @_qkv_proj_kernel(%arg0: i32, %arg1: memref<16x32xf32, #tpu.memory_space<vmem>>, %arg2: memref<16x32xf32, #tpu.memory_space<vmem>>, %arg3: memref<16x32xf32, #tpu.memory_space<vmem>>, %arg4: memref<32x32xbf16, #tpu.memory_space<vmem>>, %arg5: memref<1x32xf32, #tpu.memory_space<vmem>>, %arg6: memref<32x32xbf16, #tpu.memory_space<vmem>>, %arg7: memref<1x32xf32, #tpu.memory_space<vmem>>, %arg8: memref<32x32xbf16, #tpu.memory_space<vmem>>, %arg9: memref<1x32xf32, #tpu.memory_space<vmem>>, %arg10: memref<16x32xbf16, #tpu.memory_space<vmem>>, %arg11: memref<16x32xbf16, #tpu.memory_space<vmem>>, %arg12: memref<16x32xbf16, #tpu.memory_space<vmem>>) attributes {dimension_semantics = [#tpu.dimension_semantics<parallel>], iteration_bounds = array<i64: 1>, scalar_prefetch = 0 : i64, scratch_operands = 0 : i64, tpu.core_type = #tpu.core_type<tc>, window_params = [{transform_indices = @transform_0, window_bounds = array<i64: 16, 32>}, {transform_indices = @transform_1, window_bounds = array<i64: 16, 32>}, {transform_indices = @transform_2, window_bounds = array<i64: 16, 32>}, {pipeline_mode = #tpu.pipeline_mode<synchronous>, transform_indices = @transform_3, window_bounds = array<i64: 32, 32>}, {pipeline_mode = #tpu.pipeline_mode<synchronous>, transform_indices = @transform_4, window_bounds = array<i64: 1, 32>}, {pipeline_mode = #tpu.pipeline_mode<synchronous>, transform_indices = @transform_5, window_bounds = array<i64: 32, 32>}, {pipeline_mode = #tpu.pipeline_mode<synchronous>, transform_indices = @transform_6, window_bounds = array<i64: 1, 32>}, {pipeline_mode = #tpu.pipeline_mode<synchronous>, transform_indices = @transform_7, window_bounds = array<i64: 32, 32>}, {pipeline_mode = #tpu.pipeline_mode<synchronous>, transform_indices = @transform_8, window_bounds = array<i64: 1, 32>}, {transform_indices = @transform_9, window_bounds = array<i64: 16, 32>}, {transform_indices = @transform_10, window_bounds = array<i64: 16, 32>}, {transform_indices = @transform_11, window_bounds = array<i64: 16, 32>}]} {
    %c0 = arith.constant 0 : index
    %c0_0 = arith.constant 0 : index
    %0 = vector.load %arg1[%c0, %c0_0] : memref<16x32xf32, #tpu.memory_space<vmem>>, vector<16x32xf32>
    %1 = arith.truncf %0 : vector<16x32xf32> to vector<16x32xbf16>
    %c0_1 = arith.constant 0 : index
    %c0_2 = arith.constant 0 : index
    %2 = vector.load %arg2[%c0_1, %c0_2] : memref<16x32xf32, #tpu.memory_space<vmem>>, vector<16x32xf32>
    %3 = arith.truncf %2 : vector<16x32xf32> to vector<16x32xbf16>
    %c0_3 = arith.constant 0 : index
    %c0_4 = arith.constant 0 : index
    %4 = vector.load %arg3[%c0_3, %c0_4] : memref<16x32xf32, #tpu.memory_space<vmem>>, vector<16x32xf32>
    %5 = arith.truncf %4 : vector<16x32xf32> to vector<16x32xbf16>
    %c0_5 = arith.constant 0 : index
    %c0_6 = arith.constant 0 : index
    %6 = vector.load %arg4[%c0_5, %c0_6] : memref<32x32xbf16, #tpu.memory_space<vmem>>, vector<32x32xbf16>
    %cst = arith.constant dense<0.000000e+00> : vector<16x32xf32>
    %7 = tpu.matmul %1, %6, %cst {dimension_numbers = #tpu.dot_dimension_numbers<[1], [0], [0], [1], [0, 0, 1, 1], [], []>} : vector<16x32xbf16>, vector<32x32xbf16>, vector<16x32xf32> -> vector<16x32xf32>
    %c0_7 = arith.constant 0 : index
    %c0_8 = arith.constant 0 : index
    %8 = vector.load %arg5[%c0_7, %c0_8] : memref<1x32xf32, #tpu.memory_space<vmem>>, vector<1x32xf32>
    %9 = vector.broadcast %8 : vector<1x32xf32> to vector<16x32xf32>
    %10 = arith.addf %7, %9 : vector<16x32xf32>
    %11 = arith.truncf %10 : vector<16x32xf32> to vector<16x32xbf16>
    %c0_9 = arith.constant 0 : index
    %c0_10 = arith.constant 0 : index
    %12 = vector.load %arg10[%c0_9, %c0_10] : memref<16x32xbf16, #tpu.memory_space<vmem>>, vector<16x32xbf16>
    tpu.vector_store %arg10[%c0_9, %c0_10], %11 {strides = array<i32>} : memref<16x32xbf16, #tpu.memory_space<vmem>>, vector<16x32xbf16>,
    %c0_11 = arith.constant 0 : index
    %c0_12 = arith.constant 0 : index
    %13 = vector.load %arg6[%c0_11, %c0_12] : memref<32x32xbf16, #tpu.memory_space<vmem>>, vector<32x32xbf16>
    %cst_13 = arith.constant dense<0.000000e+00> : vector<16x32xf32>
    %14 = tpu.matmul %3, %13, %cst_13 {dimension_numbers = #tpu.dot_dimension_numbers<[1], [0], [0], [1], [0, 0, 1, 1], [], []>} : vector<16x32xbf16>, vector<32x32xbf16>, vector<16x32xf32> -> vector<16x32xf32>
    %c0_14 = arith.constant 0 : index
    %c0_15 = arith.constant 0 : index
    %15 = vector.load %arg7[%c0_14, %c0_15] : memref<1x32xf32, #tpu.memory_space<vmem>>, vector<1x32xf32>
    %16 = vector.broadcast %15 : vector<1x32xf32> to vector<16x32xf32>
    %17 = arith.addf %14, %16 : vector<16x32xf32>
    %18 = arith.truncf %17 : vector<16x32xf32> to vector<16x32xbf16>
    %c0_16 = arith.constant 0 : index
    %c0_17 = arith.constant 0 : index
    %19 = vector.load %arg11[%c0_16, %c0_17] : memref<16x32xbf16, #tpu.memory_space<vmem>>, vector<16x32xbf16>
    tpu.vector_store %arg11[%c0_16, %c0_17], %18 {strides = array<i32>} : memref<16x32xbf16, #tpu.memory_space<vmem>>, vector<16x32xbf16>,
    %c0_18 = arith.constant 0 : index
    %c0_19 = arith.constant 0 : index
    %20 = vector.load %arg8[%c0_18, %c0_19] : memref<32x32xbf16, #tpu.memory_space<vmem>>, vector<32x32xbf16>
    %cst_20 = arith.constant dense<0.000000e+00> : vector<16x32xf32>
    %21 = tpu.matmul %5, %20, %cst_20 {dimension_numbers = #tpu.dot_dimension_numbers<[1], [0], [0], [1], [0, 0, 1, 1], [], []>} : vector<16x32xbf16>, vector<32x32xbf16>, vector<16x32xf32> -> vector<16x32xf32>
    %c0_21 = arith.constant 0 : index
    %c0_22 = arith.constant 0 : index
    %22 = vector.load %arg9[%c0_21, %c0_22] : memref<1x32xf32, #tpu.memory_space<vmem>>, vector<1x32xf32>
    %23 = vector.broadcast %22 : vector<1x32xf32> to vector<16x32xf32>
    %24 = arith.addf %21, %23 : vector<16x32xf32>
    %25 = arith.truncf %24 : vector<16x32xf32> to vector<16x32xbf16>
    %c0_23 = arith.constant 0 : index
    %c0_24 = arith.constant 0 : index
    %26 = vector.load %arg12[%c0_23, %c0_24] : memref<16x32xbf16, #tpu.memory_space<vmem>>, vector<16x32xbf16>
    tpu.vector_store %arg12[%c0_23, %c0_24], %25 {strides = array<i32>} : memref<16x32xbf16, #tpu.memory_space<vmem>>, vector<16x32xbf16>,
    return
  }
  func.func @transform_0(%arg0: i32) -> (i32, i32) {
    %c0_i32 = arith.constant 0 : i32
    %c0_i32_0 = arith.constant 0 : i32
    return %arg0, %c0_i32 : i32, i32
  }
  func.func @transform_1(%arg0: i32) -> (i32, i32) {
    %c0_i32 = arith.constant 0 : i32
    %c0_i32_0 = arith.constant 0 : i32
    return %arg0, %c0_i32 : i32, i32
  }
  func.func @transform_2(%arg0: i32) -> (i32, i32) {
    %c0_i32 = arith.constant 0 : i32
    %c0_i32_0 = arith.constant 0 : i32
    return %arg0, %c0_i32 : i32, i32
  }
  func.func @transform_3(%arg0: i32) -> (i32, i32) {
    %c0_i32 = arith.constant 0 : i32
    %c0_i32_0 = arith.constant 0 : i32
    %c0_i32_1 = arith.constant 0 : i32
    return %c0_i32, %c0_i32_0 : i32, i32
  }
  func.func @transform_4(%arg0: i32) -> (i32, i32) {
    %c0_i32 = arith.constant 0 : i32
    %c0_i32_0 = arith.constant 0 : i32
    %c0_i32_1 = arith.constant 0 : i32
    return %c0_i32, %c0_i32_0 : i32, i32
  }
  func.func @transform_5(%arg0: i32) -> (i32, i32) {
    %c0_i32 = arith.constant 0 : i32
    %c0_i32_0 = arith.constant 0 : i32
    %c0_i32_1 = arith.constant 0 : i32
    return %c0_i32, %c0_i32_0 : i32, i32
  }
  func.func @transform_6(%arg0: i32) -> (i32, i32) {
    %c0_i32 = arith.constant 0 : i32
    %c0_i32_0 = arith.constant 0 : i32
    %c0_i32_1 = arith.constant 0 : i32
    return %c0_i32, %c0_i32_0 : i32, i32
  }
  func.func @transform_7(%arg0: i32) -> (i32, i32) {
    %c0_i32 = arith.constant 0 : i32
    %c0_i32_0 = arith.constant 0 : i32
    %c0_i32_1 = arith.constant 0 : i32
    return %c0_i32, %c0_i32_0 : i32, i32
  }
  func.func @transform_8(%arg0: i32) -> (i32, i32) {
    %c0_i32 = arith.constant 0 : i32
    %c0_i32_0 = arith.constant 0 : i32
    %c0_i32_1 = arith.constant 0 : i32
    return %c0_i32, %c0_i32_0 : i32, i32
  }
  func.func @transform_9(%arg0: i32) -> (i32, i32) {
    %c0_i32 = arith.constant 0 : i32
    %c0_i32_0 = arith.constant 0 : i32
    return %arg0, %c0_i32 : i32, i32
  }
  func.func @transform_10(%arg0: i32) -> (i32, i32) {
    %c0_i32 = arith.constant 0 : i32
    %c0_i32_0 = arith.constant 0 : i32
    return %arg0, %c0_i32 : i32, i32
  }
  func.func @transform_11(%arg0: i32) -> (i32, i32) {
    %c0_i32 = arith.constant 0 : i32
    %c0_i32_0 = arith.constant 0 : i32
    return %arg0, %c0_i32 : i32, i32
  }
}

module attributes {stable_mosaic.version = 11 : i64} {
  func.func @_attn_kernel(%arg0: i32, %arg1: i32, %arg2: memref<1x4x8x8xbf16, #tpu.memory_space<vmem>>, %arg3: memref<1x4x8x8xbf16, #tpu.memory_space<vmem>>, %arg4: memref<1x4x8x8xbf16, #tpu.memory_space<vmem>>, %arg5: memref<1x8x8xi8, #tpu.memory_space<vmem>>, %arg6: memref<1x4x8x8xbf16, #tpu.memory_space<vmem>>) attributes {dimension_semantics = [#tpu.dimension_semantics<parallel>, #tpu.dimension_semantics<parallel>], iteration_bounds = array<i64: 2, 1>, scalar_prefetch = 0 : i64, scratch_operands = 0 : i64, tpu.core_type = #tpu.core_type<tc>, window_params = [{transform_indices = @transform_0, window_bounds = array<i64: 1, 4, 8, 8>}, {transform_indices = @transform_1, window_bounds = array<i64: 1, 4, 8, 8>}, {transform_indices = @transform_2, window_bounds = array<i64: 1, 4, 8, 8>}, {transform_indices = @transform_3, window_bounds = array<i64: 1, 8, 8>}, {transform_indices = @transform_4, window_bounds = array<i64: 1, 4, 8, 8>}]} {
    %c0 = arith.constant 0 : index
    %c0_0 = arith.constant 0 : index
    %c0_1 = arith.constant 0 : index
    %c0_2 = arith.constant 0 : index
    %0 = vector.load %arg2[%c0, %c0_0, %c0_1, %c0_2] : memref<1x4x8x8xbf16, #tpu.memory_space<vmem>>, vector<1x4x8x8xbf16>
    %1 = vector.shape_cast %0 : vector<1x4x8x8xbf16> to vector<4x8x8xbf16>
    %c0_3 = arith.constant 0 : index
    %c0_4 = arith.constant 0 : index
    %c0_5 = arith.constant 0 : index
    %c0_6 = arith.constant 0 : index
    %2 = vector.load %arg3[%c0_3, %c0_4, %c0_5, %c0_6] : memref<1x4x8x8xbf16, #tpu.memory_space<vmem>>, vector<1x4x8x8xbf16>
    %3 = vector.shape_cast %2 : vector<1x4x8x8xbf16> to vector<4x8x8xbf16>
    %c0_7 = arith.constant 0 : index
    %c0_8 = arith.constant 0 : index
    %c0_9 = arith.constant 0 : index
    %c0_10 = arith.constant 0 : index
    %4 = vector.load %arg4[%c0_7, %c0_8, %c0_9, %c0_10] : memref<1x4x8x8xbf16, #tpu.memory_space<vmem>>, vector<1x4x8x8xbf16>
    %5 = vector.shape_cast %4 : vector<1x4x8x8xbf16> to vector<4x8x8xbf16>
    %c0_11 = arith.constant 0 : index
    %c0_12 = arith.constant 0 : index
    %c0_13 = arith.constant 0 : index
    %6 = vector.load %arg5[%c0_11, %c0_12, %c0_13] : memref<1x8x8xi8, #tpu.memory_space<vmem>>, vector<1x8x8xi8>
    %7 = vector.shape_cast %6 : vector<1x8x8xi8> to vector<8x8xi8>
    %8 = arith.sitofp %7 : vector<8x8xi8> to vector<8x8xf32>
    "tpu.trace_start"() <{level = 10 : i32, message = "hqd,hkd->hqk"}> : () -> ()
    %cst = arith.constant dense<0.000000e+00> : vector<4x8x8xf32>
    %9 = tpu.matmul %1, %3, %cst {dimension_numbers = #tpu.dot_dimension_numbers<[2], [2], [1], [1], [0, 0, 0, 1, 1, 1], [0], [0]>} : vector<4x8x8xbf16>, vector<4x8x8xbf16>, vector<4x8x8xf32> -> vector<4x8x8xf32>
    "tpu.trace_stop"() : () -> ()
    %cst_14 = arith.constant 0.353553385 : f32
    %10 = vector.broadcast %cst_14 : f32 to vector<4x8x8xf32>
    %11 = arith.mulf %9, %10 : vector<4x8x8xf32>
    %12 = vector.shape_cast %8 : vector<8x8xf32> to vector<1x8x8xf32>
    %cst_15 = arith.constant 0.000000e+00 : f32
    %13 = vector.broadcast %cst_15 : f32 to vector<1x8x8xf32>
    %14 = arith.cmpf one, %12, %13 : vector<1x8x8xf32>
    %cst_16 = arith.constant -1.000000e+09 : f32
    %15 = vector.shape_cast %14 : vector<1x8x8xi1> to vector<1x8x8xi1>
    %16 = vector.broadcast %15 : vector<1x8x8xi1> to vector<4x8x8xi1>
    %17 = vector.broadcast %cst_16 : f32 to vector<4x8x8xf32>
    %18 = arith.select %16, %17, %11 : vector<4x8x8xi1>, vector<4x8x8xf32>
    %cst_17 = arith.constant dense<0xFF800000> : vector<4x8xf32>
    %19 = vector.multi_reduction <maximumf>, %18, %cst_17 [2] : vector<4x8x8xf32> to vector<4x8xf32>
    %20 = vector.shape_cast %19 : vector<4x8xf32> to vector<4x8x1xf32>
    %21 = vector.broadcast %20 : vector<4x8x1xf32> to vector<4x8x8xf32>
    %22 = arith.subf %18, %21 : vector<4x8x8xf32>
    %23 = math.exp %22 : vector<4x8x8xf32>
    %cst_18 = arith.constant dense<0.000000e+00> : vector<4x8xf32>
    %24 = vector.multi_reduction <add>, %23, %cst_18 [2] : vector<4x8x8xf32> to vector<4x8xf32>
    %25 = vector.shape_cast %24 : vector<4x8xf32> to vector<4x8x1xf32>
    %26 = tpu.reciprocal %25 {approx = true} : vector<4x8x1xf32> -> vector<4x8x1xf32>
    %27 = vector.broadcast %26 : vector<4x8x1xf32> to vector<4x8x8xf32>
    %28 = arith.mulf %23, %27 : vector<4x8x8xf32>
    %29 = arith.truncf %28 : vector<4x8x8xf32> to vector<4x8x8xbf16>
    "tpu.trace_start"() <{level = 10 : i32, message = "hqk,hkd->hqd"}> : () -> ()
    %cst_19 = arith.constant dense<0.000000e+00> : vector<4x8x8xf32>
    %30 = tpu.matmul %29, %5, %cst_19 {dimension_numbers = #tpu.dot_dimension_numbers<[2], [1], [1], [2], [0, 0, 0, 1, 1, 2], [0], [0]>} : vector<4x8x8xbf16>, vector<4x8x8xbf16>, vector<4x8x8xf32> -> vector<4x8x8xf32>
    "tpu.trace_stop"() : () -> ()
    %31 = arith.truncf %30 : vector<4x8x8xf32> to vector<4x8x8xbf16>
    %c0_20 = arith.constant 0 : index
    %c0_21 = arith.constant 0 : index
    %c0_22 = arith.constant 0 : index
    %c0_23 = arith.constant 0 : index
    %32 = vector.load %arg6[%c0_20, %c0_21, %c0_22, %c0_23] : memref<1x4x8x8xbf16, #tpu.memory_space<vmem>>, vector<1x4x8x8xbf16>
    %33 = vector.shape_cast %32 : vector<1x4x8x8xbf16> to vector<4x8x8xbf16>
    %34 = vector.shape_cast %31 : vector<4x8x8xbf16> to vector<1x4x8x8xbf16>
    tpu.vector_store %arg6[%c0_20, %c0_21, %c0_22, %c0_23], %34 {strides = array<i32>} : memref<1x4x8x8xbf16, #tpu.memory_space<vmem>>, vector<1x4x8x8xbf16>,
    return
  }
  func.func @transform_0(%arg0: i32, %arg1: i32) -> (i32, i32, i32, i32) {
    %c0_i32 = arith.constant 0 : i32
    %c0_i32_0 = arith.constant 0 : i32
    %c0_i32_1 = arith.constant 0 : i32
    return %arg0, %c0_i32, %arg1, %c0_i32_0 : i32, i32, i32, i32
  }
  func.func @transform_1(%arg0: i32, %arg1: i32) -> (i32, i32, i32, i32) {
    %c0_i32 = arith.constant 0 : i32
    %c0_i32_0 = arith.constant 0 : i32
    %c0_i32_1 = arith.constant 0 : i32
    %c0_i32_2 = arith.constant 0 : i32
    return %arg0, %c0_i32, %c0_i32_0, %c0_i32_1 : i32, i32, i32, i32
  }
  func.func @transform_2(%arg0: i32, %arg1: i32) -> (i32, i32, i32, i32) {
    %c0_i32 = arith.constant 0 : i32
    %c0_i32_0 = arith.constant 0 : i32
    %c0_i32_1 = arith.constant 0 : i32
    %c0_i32_2 = arith.constant 0 : i32
    return %arg0, %c0_i32, %c0_i32_0, %c0_i32_1 : i32, i32, i32, i32
  }
  func.func @transform_3(%arg0: i32, %arg1: i32) -> (i32, i32, i32) {
    %c0_i32 = arith.constant 0 : i32
    %c0_i32_0 = arith.constant 0 : i32
    return %arg0, %arg1, %c0_i32 : i32, i32, i32
  }
  func.func @transform_4(%arg0: i32, %arg1: i32) -> (i32, i32, i32, i32) {
    %c0_i32 = arith.constant 0 : i32
    %c0_i32_0 = arith.constant 0 : i32
    %c0_i32_1 = arith.constant 0 : i32
    return %arg0, %c0_i32, %arg1, %c0_i32_0 : i32, i32, i32, i32
  }
}

module attributes {stable_mosaic.version = 11 : i64} {
  func.func @_linear_kernel(%arg0: i32, %arg1: memref<16x32xbf16, #tpu.memory_space<vmem>>, %arg2: memref<32x32xbf16, #tpu.memory_space<vmem>>, %arg3: memref<1x32xf32, #tpu.memory_space<vmem>>, %arg4: memref<16x32xf32, #tpu.memory_space<vmem>>) attributes {dimension_semantics = [#tpu.dimension_semantics<parallel>], iteration_bounds = array<i64: 1>, scalar_prefetch = 0 : i64, scratch_operands = 0 : i64, tpu.core_type = #tpu.core_type<tc>, window_params = [{transform_indices = @transform_0, window_bounds = array<i64: 16, 32>}, {pipeline_mode = #tpu.pipeline_mode<synchronous>, transform_indices = @transform_1, window_bounds = array<i64: 32, 32>}, {pipeline_mode = #tpu.pipeline_mode<synchronous>, transform_indices = @transform_2, window_bounds = array<i64: 1, 32>}, {transform_indices = @transform_3, window_bounds = array<i64: 16, 32>}]} {
    %c0 = arith.constant 0 : index
    %c0_0 = arith.constant 0 : index
    %0 = vector.load %arg1[%c0, %c0_0] : memref<16x32xbf16, #tpu.memory_space<vmem>>, vector<16x32xbf16>
    %c0_1 = arith.constant 0 : index
    %c0_2 = arith.constant 0 : index
    %1 = vector.load %arg2[%c0_1, %c0_2] : memref<32x32xbf16, #tpu.memory_space<vmem>>, vector<32x32xbf16>
    %cst = arith.constant dense<0.000000e+00> : vector<16x32xf32>
    %2 = tpu.matmul %0, %1, %cst {dimension_numbers = #tpu.dot_dimension_numbers<[1], [0], [0], [1], [0, 0, 1, 1], [], []>} : vector<16x32xbf16>, vector<32x32xbf16>, vector<16x32xf32> -> vector<16x32xf32>
    %c0_3 = arith.constant 0 : index
    %c0_4 = arith.constant 0 : index
    %3 = vector.load %arg3[%c0_3, %c0_4] : memref<1x32xf32, #tpu.memory_space<vmem>>, vector<1x32xf32>
    %4 = vector.broadcast %3 : vector<1x32xf32> to vector<16x32xf32>
    %5 = arith.addf %2, %4 : vector<16x32xf32>
    %c0_5 = arith.constant 0 : index
    %c0_6 = arith.constant 0 : index
    %6 = vector.load %arg4[%c0_5, %c0_6] : memref<16x32xf32, #tpu.memory_space<vmem>>, vector<16x32xf32>
    tpu.vector_store %arg4[%c0_5, %c0_6], %5 {strides = array<i32>} : memref<16x32xf32, #tpu.memory_space<vmem>>, vector<16x32xf32>,
    return
  }
  func.func @transform_0(%arg0: i32) -> (i32, i32) {
    %c0_i32 = arith.constant 0 : i32
    %c0_i32_0 = arith.constant 0 : i32
    return %arg0, %c0_i32 : i32, i32
  }
  func.func @transform_1(%arg0: i32) -> (i32, i32) {
    %c0_i32 = arith.constant 0 : i32
    %c0_i32_0 = arith.constant 0 : i32
    %c0_i32_1 = arith.constant 0 : i32
    return %c0_i32, %c0_i32_0 : i32, i32
  }
  func.func @transform_2(%arg0: i32) -> (i32, i32) {
    %c0_i32 = arith.constant 0 : i32
    %c0_i32_0 = arith.constant 0 : i32
    %c0_i32_1 = arith.constant 0 : i32
    return %c0_i32, %c0_i32_0 : i32, i32
  }
  func.func @transform_3(%arg0: i32) -> (i32, i32) {
    %c0_i32 = arith.constant 0 : i32
    %c0_i32_0 = arith.constant 0 : i32
    return %arg0, %c0_i32 : i32, i32
  }
}

</mosaic_0001>

<bundles_post_ra>
// kernel: multi_head_attention.5
= control target key start
LH: loop header
LB: loop body
LE: loop exit
PB: predicated region body
PF: predicated region fallthrough
CT: control target
= control target key end

     0   :  { %s165_s0 = inlined_call_operand.vmem [shape: bf16[16,32], index: 0, kind: input, shape index: {}]   ;;  %s166_s1 = inlined_call_operand.vmem [shape: bf16[32,32], index: 1, kind: input, shape index: {}]   ;;  %s167_s2 = inlined_call_operand.vmem [shape: f32[1,32], index: 2, kind: input, shape index: {}]   ;;  %s168_s3 = inlined_call_operand.hbm [shape: f32[16,32], index: 3, kind: output, shape index: {}]  }
   0x1   :  { %v96_v0 = vld [vmem:[%s166_s1 + $0x8] sm:$0xff] }
   0x2   :  { %8 = vsyncpa [#allocation3], 0  ;;  %53 = vmatpush.bf16.msra.mxu0 %v96_v0  ;;  %v95_v1 = vld [vmem:[%s166_s1] sm:$0xff]  ;;  %vm43_vm0 = vcmask 261120   ;;  %s127_s20 = smov [#allocation2]   ;;  %s69_s1 = sshll.u32 %s168_s3, 4  ;;  %s70_s1 = int_to_ptr.hbm [resolvable:$true] %s69_s1 }
   0x3   :  { %v94_v2 = vld [vmem:[%s165_s0] sm:$0xff]  ;;  %s67_s21 = sshll.u32 %s127_s20, 4  ;;  %s128_s0 = smov 128   ;;  %s68_s21 = int_to_ptr.vmem [resolvable:$true] %s67_s21 }
   0x4   :  { %v100_v3 = vld [vmem:[%s167_s2] ss:$0 sm:$0xff]  ;;  %s129_s24 = smov 8  }
   0x6   :  { %54 = vmatpush.bf16.msra.mxu0 %v95_v1 }
   0x9   :  { %93 = vmatmul.msk.bf16.vlgmr.msra.gmra.mxu0 %vm43_vm0, %v94_v2 }
  0x86   :  { %v56_v4 = vpop.f32.mrf.mxu0 }
  0x87   :  { %v57_v5 = vadd.f32 %v100_v3, %v56_v4 }
  0x89   :  { %61 = vst.msk [vmem:[#allocation2] sm:$0xff] %vm43_vm0, %v57_v5 }
  0x8e   :  { %v58_v6 = vpop.f32.mrf.mxu0 }
  0x8f   :  { %v59_v7 = vadd.f32 %v100_v3, %v58_v6 }
  0x91   :  { %62 = vst.msk [vmem:[#allocation2 + $0x8] sm:$0xff] %vm43_vm0, %v59_v7 }
  0x92   :  { %75 = dma.vmem_to_hbm [thread:$0]  %s68_s21, 256, %s70_s1, [#allocation3], %s128_s0, %s128_s0, %s129_s24  }
  0x93   :  { %125 = dma.done.wait [#allocation3], 256  }
  0x94   :  { %126 = vsyncadd [#allocation3], 4294967040 }
  0x95   :  { %80 = vsyncpa [#allocation3], 1 }

// kernel: multi_head_attention.3
= control target key start
LH: loop header
LB: loop body
LE: loop exit
PB: predicated region body
PF: predicated region fallthrough
CT: control target
= control target key end

     0   :  { %vm65_vm0 = vcmask 261120   ;;  %vm85_vm1 = vcmask 257024   ;;  %s347_s3 = inlined_call_operand.vmem [shape: bf16[32,32], index: 3, kind: input, shape index: {}]   ;;  %s348_s5 = inlined_call_operand.vmem [shape: bf16[32,32], index: 5, kind: input, shape index: {}]   ;;  %s349_s7 = inlined_call_operand.vmem [shape: bf16[32,32], index: 7, kind: input, shape index: {}]   ;;  %s350_s0 = inlined_call_operand.vmem [shape: f32[16,32], index: 0, kind: input, shape index: {}]   ;;  %s351_s1 = inlined_call_operand.vmem [shape: f32[16,32], index: 1, kind: input, shape index: {}]   ;;  %s352_s2 = inlined_call_operand.vmem [shape: f32[16,32], index: 2, kind: input, shape index: {}]   ;;  %s353_s4 = inlined_call_operand.vmem [shape: f32[1,32], index: 4, kind: input, shape index: {}]   ;;  %s354_s6 = inlined_call_operand.vmem [shape: f32[1,32], index: 6, kind: input, shape index: {}]   ;;  %s355_s8 = inlined_call_operand.vmem [shape: f32[1,32], index: 8, kind: input, shape index: {}]   ;;  %s356_s9 = inlined_call_operand.vmem [shape: bf16[16,32], index: 9, kind: output, shape index: {0}]   ;;  %s357_s10 = inlined_call_operand.vmem [shape: bf16[16,32], index: 10, kind: output, shape index: {1}]   ;;  %s358_s11 = inlined_call_operand.vmem [shape: bf16[16,32], index: 11, kind: output, shape index: {2}]  }
   0x1   :  { %v210_v0 = vld [vmem:[%s347_s3 + $0x8] sm:$0xff]  ;;  %v209_v3 = vld [vmem:[%s347_s3] sm:$0xff] }
   0x2   :  { %v212_v1 = vld [vmem:[%s348_s5 + $0x8] sm:$0xff]  ;;  %v211_v4 = vld [vmem:[%s348_s5] sm:$0xff]  ;;  %75 = vmatpush.bf16.msra.mxu0 %v210_v0 }
   0x3   :  { %v214_v2 = vld [vmem:[%s349_s7 + $0x8] sm:$0xff]  ;;  %v213_v5 = vld [vmem:[%s349_s7] sm:$0xff]  ;;  %117 = vmatpush.bf16.msra.mxu1 %v212_v1 }
   0x4   :  { %v36_v6 = vld [vmem:[%s350_s0] sm:$0xff]  ;;  %v37_v7 = vld [vmem:[%s350_s0 + $0x8] sm:$0xff]  ;;  %158 = vmatpush.bf16.msra.mxu2 %v214_v2 }
   0x5   :  { %v39_v8 = vld [vmem:[%s351_s1] sm:$0xff]  ;;  %v40_v9 = vld [vmem:[%s351_s1 + $0x8] sm:$0xff]  ;;  %v38_v12 = vpack.c.bf16 %v37_v7, %v36_v6 }
   0x6   :  { %v42_v10 = vld [vmem:[%s352_s2] sm:$0xff]  ;;  %v43_v11 = vld [vmem:[%s352_s2 + $0x8] sm:$0xff]  ;;  %v41_v13 = vpack.c.bf16 %v40_v9, %v39_v8  ;;  %76 = vmatpush.bf16.msra.mxu0 %v209_v3 }
   0x7   :  { %118 = vmatpush.bf16.msra.mxu1 %v211_v4  ;;  %v44_v14 = vpack.c.bf16 %v43_v11, %v42_v10  ;;  %v215_v15 = vld [vmem:[%s353_s4] ss:$0 sm:$0xff] }
   0x8   :  { %159 = vmatpush.bf16.msra.mxu2 %v213_v5  ;;  %v216_v16 = vld [vmem:[%s354_s6] ss:$0 sm:$0xff] }
   0x9   :  { %190 = vmatmul.msk.bf16.vlgmr.msra.gmra.mxu0 %vm65_vm0, %v38_v12  ;;  %v217_v23 = vld [vmem:[%s355_s8] ss:$0 sm:$0xff] }
   0xa   :  { %199 = vmatmul.msk.bf16.vlgmr.msra.gmra.mxu1 %vm65_vm0, %v41_v13 }
   0xb   :  { %208 = vmatmul.msk.bf16.vlgmr.msra.gmra.mxu2 %vm65_vm0, %v44_v14 }
  0x86   :  { %v78_v17 = vpop.f32.mrf.mxu0 }
  0x87   :  { %v120_v18 = vpop.f32.mrf.mxu1  ;;  %v79_v19 = vadd.f32 %v215_v15, %v78_v17 }
  0x88   :  { %v121_v20 = vadd.f32 %v216_v16, %v120_v18 }
  0x89   :  { %v83_v21 = vpack.c.bf16 %v79_v19, %v79_v19 }
  0x8a   :  { %v125_v22 = vpack.c.bf16 %v121_v20, %v121_v20 }
  0x8b   :  { %86 = vst.msk [vmem:[%s356_s9] sm:$0xf] %vm85_vm1, %v83_v21 }
  0x8c   :  { %127 = vst.msk [vmem:[%s357_s10] sm:$0xf] %vm85_vm1, %v125_v22 }
  0x8e   :  { %v161_v24 = vpop.f32.mrf.mxu2  ;;  %v80_v26 = vpop.f32.mrf.mxu0 }
  0x8f   :  { %v162_v25 = vadd.f32 %v217_v23, %v161_v24  ;;  %v122_v27 = vpop.f32.mrf.mxu1  ;;  %v81_v28 = vadd.f32 %v215_v15, %v80_v26 }
  0x90   :  { %v123_v29 = vadd.f32 %v216_v16, %v122_v27 }
  0x91   :  { %v166_v30 = vpack.c.bf16 %v162_v25, %v162_v25  ;;  %v84_v31 = vpack.c.bf16 %v81_v28, %v81_v28 }
  0x92   :  { %v126_v32 = vpack.c.bf16 %v123_v29, %v123_v29 }
  0x93   :  { %168 = vst.msk [vmem:[%s358_s11] sm:$0xf] %vm85_vm1, %v166_v30 }
  0x94   :  { %87 = vst.msk [vmem:[%s356_s9 + $0x4] sm:$0xf] %vm85_vm1, %v84_v31 }
  0x95   :  { %128 = vst.msk [vmem:[%s357_s10 + $0x4] sm:$0xf] %vm85_vm1, %v126_v32 }
  0x96   :  { %v163_v33 = vpop.f32.mrf.mxu2 }
  0x97   :  { %v164_v34 = vadd.f32 %v217_v23, %v163_v33 }
  0x99   :  { %v167_v35 = vpack.c.bf16 %v164_v34, %v164_v34 }
  0x9b   :  { %169 = vst.msk [vmem:[%s358_s11 + $0x4] sm:$0xf] %vm85_vm1, %v167_v35 }

// kernel: multi_head_attention.4
= control target key start
LH: loop header
LB: loop body
LE: loop exit
PB: predicated region body
PF: predicated region fallthrough
CT: control target
= control target key end

     0   :  { %s774_s15 = smov 0   ;;  %s776_s16 = smov 0   ;;  %s846_s0 = inlined_call_operand.vmem [shape: bf16[2,4,8,8], index: 0, kind: input, shape index: {}]   ;;  %s847_s1 = inlined_call_operand.vmem [shape: bf16[2,4,8,8], index: 1, kind: input, shape index: {}]   ;;  %s848_s2 = inlined_call_operand.vmem [shape: bf16[2,4,8,8], index: 2, kind: input, shape index: {}]   ;;  %s849_s3 = inlined_call_operand.vmem [shape: s8[2,8,8], index: 3, kind: input, shape index: {}]   ;;  %s850_s4 = inlined_call_operand.vmem [shape: bf16[2,4,8,8], index: 4, kind: output, shape index: {}]  }
   0x1   :  { %s778_s17 = smov 0  }
   0x2 LB: > { %s26_s18 = sadd.s32 1, %s743_s16  ;;  %p661_p0 = scmp.ge.s32.totalorder %s747_s17, 1  ;;  %s747_s17 = sphi %s778_s17, %s14_s17   ;;  %s743_s16 = sphi %s776_s16, %s852_s16   ;;  %s739_s15 = sphi %s774_s15, %s851_s15  }
   0x3   : > { %p28_p1 = scmp.ge.s32.totalorder %s26_s18, 2  ;;  %p215_p2 = scmp.lt.s32.totalorder %s747_s17, 3 }
   0x5   : > { %s854_s18 = smov (%p28_p1, %s26_s18), 0  ;;  %p216_p3 = pnand %p661_p0, %p215_p2 }
   0x6   : > { %p264_p4 = scmp.lt.s32.totalorder (!%p216_p3), %s739_s15, 1 }
   0x7   : > { %219 = sbr.rel (%p216_p3) target bundleno = 563 (0x233), region = 36 }
   0xc   : > { %s856_s15 = smov (!%p264_p4, %s739_s15), 1  ;;  %vm313_vm0 = vcmask 64512   ;;  %vm452_vm2 = vcmask 1043456   ;;  %vm530_vm3 = vcmask 60416  }
   0xd   : > { %s792_s19 = sshll.u32 %s856_s15, 4  ;;  %s668_s26 = sshll.u32 %s856_s15, 1 }
   0xe   : > { %s276_s22 = scalar_lea.vmem %s847_s1, %s792_s19  ;;  %s271_s25 = scalar_lea.vmem %s846_s0, %s792_s19 }
   0xf   : > { %v302_v0 = vld [vmem:[%s276_s22] sm:$0xf]  ;;  %v304_v1 = vld [vmem:[%s276_s22 + $0x8] sm:$0xf]  ;;  %v305_v2 = vld [vmem:[%s276_s22 + $0xc] sm:$0xf]  ;;  %s288_s29 = scalar_lea.vmem %s849_s3, %s668_s26  ;;  %s281_s6 = scalar_lea.vmem %s848_s2, %s792_s19 }
  0x10   : > { %v318_v3 = vsel %vm313_vm0, %v302_v0, 0  ;;  %v356_v4 = vsel %vm313_vm0, %v304_v1, 0  ;;  %v375_v5 = vsel %vm313_vm0, %v305_v2, 0  ;;  %v303_v6 = vld [vmem:[%s276_s22 + $0x4] sm:$0xf]  ;;  %s296_s9 = scalar_lea.vmem %s850_s4, %s792_s19 }
  0x11   : > { %327 = vmatpush.bf16.xpose.msra.mxu0 %v318_v3  ;;  %365 = vmatpush.bf16.xpose.msra.mxu2 %v356_v4  ;;  %v337_v7 = vsel %vm313_vm0, %v303_v6, 0  ;;  %v298_v8 = vld [vmem:[%s271_s25] sm:$0xf]  ;;  %v300_v9 = vld [vmem:[%s271_s25 + $0x8] sm:$0xf] }
  0x12   : > { %384 = vmatpush.bf16.xpose.msra.mxu3 %v375_v5  ;;  %346 = vmatpush.bf16.xpose.msra.mxu1 %v337_v7  ;;  %v301_v10 = vld [vmem:[%s271_s25 + $0xc] sm:$0xf]  ;;  %v299_v11 = vld [vmem:[%s271_s25 + $0x4] sm:$0xf]  ;;  %v310_v12 = vld [vmem:[%s288_s29] sm:$0x3] }
  0x13   : > { %v311_v13 = vunpack.c.0.s8 %v310_v12  ;;  %v306_v55 = vld [vmem:[%s281_s6] sm:$0xf]  ;;  %v308_v57 = vld [vmem:[%s281_s6 + $0x8] sm:$0xf]  ;;  %v307_v59 = vld [vmem:[%s281_s6 + $0x4] sm:$0xf] }
  0x14   : > { %v454_v56 = vsel %vm452_vm2, %v306_v55, 0  ;;  %v492_v58 = vsel %vm452_vm2, %v308_v57, 0  ;;  %v473_v60 = vsel %vm452_vm2, %v307_v59, 0  ;;  %v309_v61 = vld [vmem:[%s281_s6 + $0xc] sm:$0xf] }
  0x15   : > { %v312_v14 = vcvt.s32.f32 %v311_v13  ;;  %v511_v62 = vsel %vm452_vm2, %v309_v61, 0 }
  0x17   : > { %vm394_vm1 = vcmp.ne.f32.partialorder %v312_v14, 0.0 }
  0x18   : > { %671 = vmatmul.msk.bf16.vlgmr.msra.gmra.mxu0 %vm313_vm0, %v298_v8  ;;  %673 = vmatmul.msk.bf16.vlgmr.msra.gmra.mxu2 %vm313_vm0, %v300_v9 }
  0x19   : > { %674 = vmatmul.msk.bf16.vlgmr.msra.gmra.mxu3 %vm313_vm0, %v301_v10  ;;  %672 = vmatmul.msk.bf16.vlgmr.msra.gmra.mxu1 %vm313_vm0, %v299_v11 }
  0x1a   : > { %463 = vmatpush.bf16.msrb.mxu0 %v454_v56  ;;  %501 = vmatpush.bf16.msrb.mxu2 %v492_v58 }
  0x1b   : > { %482 = vmatpush.bf16.msrb.mxu1 %v473_v60  ;;  %520 = vmatpush.bf16.msrb.mxu3 %v511_v62 }
  0x95   : > { %v329_v15 = vpop.f32.mrf.mxu0 }
  0x96   : > { %v390_v16 = vmul.f32 0.35355338, %v329_v15  ;;  %v348_v17 = vpop.f32.mrf.mxu1 }
  0x97   : > { %v391_v19 = vmul.f32 0.35355338, %v348_v17 }
  0x98   : > { %v397_v18 = vsel %vm394_vm1, -1e+09, %v390_v16 }
  0x99   : > { %v401_v20 = vsel %vm313_vm0, %v397_v18, -inf  ;;  %v398_v24 = vsel %vm394_vm1, -1e+09, %v391_v19 }
  0x9a   : > { %402 = vmax.xlane.f32.xlu1 %v401_v20  ;;  %v404_v29 = vsel %vm313_vm0, %v398_v24, -inf }
  0x9b   : > { %v367_v21 = vpop.f32.mrf.mxu2 }
  0x9c   : > { %v392_v22 = vmul.f32 0.35355338, %v367_v21  ;;  %v386_v23 = vpop.f32.mrf.mxu3 }
  0x9d   : > { %v331_v25 = vpop.f32.mrf.mxu0  ;;  %v393_v26 = vmul.f32 0.35355338, %v386_v23 }
  0x9e   : > { %v399_v27 = vsel %vm394_vm1, -1e+09, %v392_v22  ;;  %v350_v30 = vpop.f32.mrf.mxu1 }
  0x9f   : > { %v407_v28 = vsel %vm313_vm0, %v399_v27, -inf  ;;  %v400_v31 = vsel %vm394_vm1, -1e+09, %v393_v26 }
  0xa0   : > { %408 = vmax.xlane.f32.xlu0 %v407_v28  ;;  %v410_v34 = vsel %vm313_vm0, %v400_v31, -inf }
  0xa2   : > { %405 = vmax.xlane.f32.xlu1 %v404_v29 }
  0xa3   : > { %v369_v32 = vpop.f32.mrf.mxu2 }
  0xa4   : > { %v388_v33 = vpop.f32.mrf.mxu3 }
  0xa8   : > { %411 = vmax.xlane.f32.xlu0 %v410_v34 }
 0x10d   : > { %v403_v35 = vpop.xlane.xlu1 %402 }
 0x10e   : > { %v413_v36 = vsub.f32 %v397_v18, %v403_v35 }
 0x110   : > { %v417_v37 = vmul.f32 1.442695, %v413_v36 }
 0x112   : > { %709 = vpow2.f32 %v417_v37 }
 0x113   : > { %v409_v38 = vpop.xlane.xlu0 %408 }
 0x114   : > { %v415_v39 = vsub.f32 %v399_v27, %v409_v38 }
 0x115   : > { %v406_v40 = vpop.xlane.xlu1 %405 }
 0x116   : > { %v421_v41 = vmul.f32 1.442695, %v415_v39  ;;  %v414_v42 = vsub.f32 %v398_v24, %v406_v40 }
 0x118   : > { %v710_v43 = vpop.eup %709  ;;  %711 = vpow2.f32 %v421_v41  ;;  %v419_v44 = vmul.f32 1.442695, %v414_v42 }
 0x119   : > { %v425_v45 = vsel %vm313_vm0, %v710_v43, 0.0 }
 0x11a   : > { %713 = vpow2.f32 %v419_v44  ;;  %426 = vadd.xlane.f32.xlu0 %v425_v45 }
 0x11b   : > { %v412_v46 = vpop.xlane.xlu0 %411 }
 0x11c   : > { %v416_v47 = vsub.f32 %v400_v31, %v412_v46 }
 0x11e   : > { %v712_v48 = vpop.eup %711  ;;  %v423_v49 = vmul.f32 1.442695, %v416_v47 }
 0x11f   : > { %v431_v50 = vsel %vm313_vm0, %v712_v48, 0.0 }
 0x120   : > { %v714_v51 = vpop.eup %713  ;;  %715 = vpow2.f32 %v423_v49  ;;  %432 = vadd.xlane.f32.xlu2 %v431_v50 }
 0x121   : > { %v428_v52 = vsel %vm313_vm0, %v714_v51, 0.0 }
 0x122   : > { %429 = vadd.xlane.f32.xlu1 %v428_v52 }
 0x126   : > { %v716_v53 = vpop.eup %715 }
 0x127   : > { %v434_v54 = vsel %vm313_vm0, %v716_v53, 0.0 }
 0x128   : > { %435 = vadd.xlane.f32.xlu2 %v434_v54 }
 0x18d   : > { %v427_v63 = vpop.xlane.xlu0 %426 }
 0x18e   : > { %717 = vrcp.f32 %v427_v63 }
 0x193   : > { %v433_v0 = vpop.xlane.xlu2 %432 }
 0x194   : > { %v718_v1 = vpop.eup %717  ;;  %719 = vrcp.f32 %v433_v0 }
 0x195   : > { %v441_v2 = vmul.f32 %v718_v1, %v710_v43  ;;  %v430_v3 = vpop.xlane.xlu1 %429 }
 0x196   : > { %721 = vrcp.f32 %v430_v3 }
 0x197   : > { %v445_v4 = vpack.c.bf16 %v441_v2, %v441_v2 }
 0x199   : > { %675 = vmatmul.msk.bf16.vlgmr.msrb.gmra.mxu0 %vm313_vm0, %v445_v4 }
 0x19a   : > { %v720_v5 = vpop.eup %719 }
 0x19b   : > { %v443_v6 = vmul.f32 %v720_v5, %v712_v48  ;;  %v436_v7 = vpop.xlane.xlu2 %435 }
 0x19c   : > { %v722_v8 = vpop.eup %721  ;;  %723 = vrcp.f32 %v436_v7 }
 0x19d   : > { %v442_v9 = vmul.f32 %v722_v8, %v714_v51  ;;  %v447_v10 = vpack.c.bf16 %v443_v6, %v443_v6 }
 0x19f   : > { %v446_v11 = vpack.c.bf16 %v442_v9, %v442_v9  ;;  %677 = vmatmul.msk.bf16.vlgmr.msrb.gmra.mxu2 %vm313_vm0, %v447_v10 }
 0x1a1   : > { %676 = vmatmul.msk.bf16.vlgmr.msrb.gmra.mxu1 %vm313_vm0, %v446_v11 }
 0x1a2   : > { %v724_v12 = vpop.eup %723 }
 0x1a3   : > { %v444_v13 = vmul.f32 %v724_v12, %v716_v53 }
 0x1a5   : > { %v448_v14 = vpack.c.bf16 %v444_v13, %v444_v13 }
 0x1a7   : > { %678 = vmatmul.msk.bf16.vlgmr.msrb.gmra.mxu3 %vm313_vm0, %v448_v14 }
 0x216   : > { %v465_v15 = vpop.f32.mrf.mxu0 }
 0x217   : > { %v526_v16 = vpack.c.bf16 %v465_v15, %v465_v15 }
 0x219   : > { %531 = vst.msk [vmem:[%s296_s9] sm:$0xf] %vm530_vm3, %v526_v16 }
 0x21e   : > { %v467_v17 = vpop.f32.mrf.mxu0  ;;  %v484_v18 = vpop.f32.mrf.mxu1 }
 0x21f   : > { %v527_v19 = vpack.c.bf16 %v484_v18, %v484_v18 }
 0x221   : > { %532 = vst.msk [vmem:[%s296_s9 + $0x4] sm:$0xf] %vm530_vm3, %v527_v19 }
 0x222   : > { %v503_v20 = vpop.f32.mrf.mxu2 }
 0x223   : > { %v528_v21 = vpack.c.bf16 %v503_v20, %v503_v20 }
 0x225   : > { %533 = vst.msk [vmem:[%s296_s9 + $0x8] sm:$0xf] %vm530_vm3, %v528_v21 }
 0x226   : > { %v486_v22 = vpop.f32.mrf.mxu1 }
 0x22a   : > { %v505_v23 = vpop.f32.mrf.mxu2  ;;  %v522_v24 = vpop.f32.mrf.mxu3 }
 0x22b   : > { %v529_v25 = vpack.c.bf16 %v522_v24, %v522_v24 }
 0x22d   : > { %534 = vst.msk [vmem:[%s296_s9 + $0xc] sm:$0xf] %vm530_vm3, %v529_v25 }
 0x232   : > { %v524_v26 = vpop.f32.mrf.mxu3 }
 0x233 PF: > { %s14_s17 = sadd.s32 1, %s747_s17   ;;  %s851_s15 = smov %s743_s16 }
 0x234   : > { %p11_p5 = scmp.ge.s32.totalorder %s14_s17, 4   ;;  %s852_s16 = smov %s854_s18 }
 0x236   :  { %13 = sbr.rel (!%p11_p5) target bundleno = 2 (0x2), region = 75 }

</bundles_post_ra>
